<compile_context>
chip_gen: v5e
topology: v5e:2x2
jax: 0.10.0
libtpu: 0.0.40
codegen_flags: <defaults>
</compile_context>

<pallas_src>
import functools

import jax
import jax.numpy as jnp
from jax import lax
from jax.experimental import pallas as pl
from jax.experimental.pallas import tpu as pltpu


def _in_conv1d_kernel(x_ref, w_ref, shift_ref, o_ref, im2col_ref,
                      *, c_in, c_out, ker, pad, TL, KP):
    """One (batch n, L-tile l) grid step.

    x_ref:      (c_in, Ltot)   resident, -1e9-padded input slab for batch n
    w_ref:      (c_out, KP)    BN-scale-folded conv weight, col j = k*c_in + ci
    shift_ref:  (c_out, 1)     folded conv-bias + BatchNorm shift
    o_ref:      (c_out, TL)    lane-dense output tile
    im2col_ref: (KP, TL)       VMEM scratch feeding the MXU
    """
    l = pl.program_id(1)
    base = pl.multiple_of(l * TL, 128)
    win = TL + 2 * pad

    # Fused sigmoid over this tile's halo window.  Halo / tail lanes hold -1e9,
    # so sigmoid there is exactly 0 == Conv1d zero padding (no mask needed).
    xw = x_ref[:, pl.ds(base, win)].astype(jnp.float32)        # (c_in, TL+2*pad)
    s = 1.0 / (1.0 + jnp.exp(-xw))

    # im2col: row k*c_in + ci holds s[ci, k : k+TL].  Static 15-way unroll of
    # lane-shifted 2-sublane stores (XLU + store slots) instead of 30 VPU MACs
    # per output element.
    K = c_in * ker
    for k in range(ker):
        im2col_ref[k * c_in:(k + 1) * c_in, :] = s[:, k:k + TL]
    if KP > K:  # zero the sublane-padding rows (matching weight cols are 0 too)
        im2col_ref[K:KP, :] = jnp.zeros((KP - K, TL), jnp.float32)

    # Single MXU matmul: (c_out, KP) x (KP, TL) -> (c_out, TL), f32 accumulate.
    y = jnp.dot(w_ref[...], im2col_ref[...],
                preferred_element_type=jnp.float32)
    y = y + shift_ref[...]                                      # bias + BN (folded)
    o_ref[...] = jnp.maximum(y, 0.0).astype(o_ref.dtype)        # ReLU


@functools.partial(jax.jit, static_argnames=("bn_eps", "tile_l"))
def in_conv1d(x, weight, bias, bn_gamma, bn_beta, bn_mean, bn_var, *,
              bn_eps=1e-5, tile_l=1024):
    """Fused Sigmoid -> Conv1d(stride=1, 'same' pad) -> BatchNorm1d(eval) -> ReLU.

    x:      (N, C_in, L)
    weight: (C_out, C_in, K)   PyTorch Conv1d layout
    bias:   (C_out,)
    bn_*:   (C_out,)           inference-mode BatchNorm parameters
    """
    N, c_in, L = x.shape
    c_out, c_in_w, ker = weight.shape
    assert c_in_w == c_in and ker % 2 == 1
    pad = (ker - 1) // 2
    K = c_in * ker
    KP = ((K + 7) // 8) * 8                      # sublane-aligned im2col rows

    # Lane-dense L tiling: TL is a multiple of 128; the last tile may be
    # partial (Pallas masks its writeback DMA -> no post-kernel crop).
    assert tile_l % 128 == 0
    TL = min(tile_l, ((L + 127) // 128) * 128)
    grid_l = (L + TL - 1) // TL
    Lp = grid_l * TL                             # slab must cover all full tiles
    Ltot = ((Lp + 2 * pad + 127) // 128) * 128   # lane-aligned slab length

    # Input slab: real data in [pad, pad+L); everything else -1e9 so sigmoid of
    # the conv halo / tail is exactly 0.
    x_p = jnp.full((N, c_in, Ltot), -1e9, x.dtype)
    x_p = x_p.at[:, :, pad:pad + L].set(x)

    # Fold BatchNorm (running stats) + conv bias into weights / a single shift.
    scale = (bn_gamma / jnp.sqrt(bn_var + bn_eps)).astype(jnp.float32)
    shift = (bn_beta + (bias - bn_mean) * scale).astype(jnp.float32)
    shift = shift.reshape(c_out, 1)
    w2 = weight.astype(jnp.float32) * scale[:, None, None]      # (c_out, c_in, ker)
    w2 = jnp.transpose(w2, (0, 2, 1)).reshape(c_out, K)         # col j = k*c_in + ci
    w2 = jnp.pad(w2, ((0, 0), (0, KP - K)))                     # (c_out, KP)

    kernel = functools.partial(
        _in_conv1d_kernel,
        c_in=c_in, c_out=c_out, ker=ker, pad=pad, TL=TL, KP=KP)

    return pl.pallas_call(
        kernel,
        out_shape=jax.ShapeDtypeStruct((N, c_out, L), x.dtype),
        grid_spec=pltpu.PrefetchScalarGridSpec(
            num_scalar_prefetch=0,
            grid=(N, grid_l),
            in_specs=[
                # x slab: same block index across l -> VMEM-resident per batch
                # element (DMA'd once per n), sliced in-kernel for the halo.
                pl.BlockSpec((None, c_in, Ltot), lambda n, l: (n, 0, 0)),
                pl.BlockSpec((c_out, KP), lambda n, l: (0, 0)),              # weights
                pl.BlockSpec((c_out, 1), lambda n, l: (0, 0)),               # shift
            ],
            out_specs=pl.BlockSpec((None, c_out, TL), lambda n, l: (n, 0, l)),
            scratch_shapes=[pltpu.VMEM((KP, TL), jnp.float32)],
        ),
        compiler_params=pltpu.CompilerParams(
            dimension_semantics=("parallel", "parallel")),
    )(x_p, w2, shift)


if __name__ == "__main__":
    key = jax.random.PRNGKey(0)
    ks = jax.random.split(key, 7)

    N, c_in, L = 2, 2, 100          # L deliberately not a multiple of 128
    c_out, ker = 64, 15
    pad = (ker - 1) // 2

    x = jax.random.normal(ks[0], (N, c_in, L), jnp.float32)
    weight = jax.random.normal(ks[1], (c_out, c_in, ker), jnp.float32) * 0.2
    bias = jax.random.normal(ks[2], (c_out,), jnp.float32) * 0.1
    bn_gamma = jax.random.uniform(ks[3], (c_out,), jnp.float32, 0.5, 1.5)
    bn_beta = jax.random.normal(ks[4], (c_out,), jnp.float32) * 0.1
    bn_mean = jax.random.normal(ks[5], (c_out,), jnp.float32) * 0.1
    bn_var = jax.random.uniform(ks[6], (c_out,), jnp.float32, 0.5, 1.5)

    y = in_conv1d(x, weight, bias, bn_gamma, bn_beta, bn_mean, bn_var)
    y = jax.block_until_ready(y)

    # Pure-JAX reference (same semantics as the torch module in eval mode).
    s = jax.nn.sigmoid(x)
    conv = lax.conv_general_dilated(
        s, weight, window_strides=(1,), padding=[(pad, pad)],
        dimension_numbers=("NCH", "OIH", "NCH"),
        precision=lax.Precision.HIGHEST)
    conv = conv + bias[None, :, None]
    bn = ((conv - bn_mean[None, :, None])
          / jnp.sqrt(bn_var[None, :, None] + 1e-5)
          * bn_gamma[None, :, None] + bn_beta[None, :, None])
    ref = jnp.maximum(bn, 0.0)

    assert y.shape == ref.shape and y.dtype == ref.dtype
    err = float(jnp.max(jnp.abs(y - ref)))
    # Tolerance leaves room for the MXU's f32 pass decomposition vs. the
    # HIGHEST-precision reference conv; structural bugs would be O(0.1-1).
    assert jnp.allclose(y, ref, atol=5e-3, rtol=5e-3), f"mismatch vs reference: {err}"
    print("KERNEL_OK")
</pallas_src>

<mosaic_0001>
module attributes {stable_mosaic.version = 11 : i64} {
  func.func @_in_conv1d_kernel(%arg0: i32, %arg1: i32, %arg2: memref<1x2x256xf32, #tpu.memory_space<vmem>>, %arg3: memref<64x32xf32, #tpu.memory_space<vmem>>, %arg4: memref<64x1xf32, #tpu.memory_space<vmem>>, %arg5: memref<1x64x128xf32, #tpu.memory_space<vmem>>, %arg6: memref<32x128xf32, #tpu.memory_space<vmem>>) attributes {dimension_semantics = [#tpu.dimension_semantics<parallel>, #tpu.dimension_semantics<parallel>], iteration_bounds = array<i64: 2, 1>, scalar_prefetch = 0 : i64, scratch_operands = 1 : i64, tpu.core_type = #tpu.core_type<tc>, window_params = [{transform_indices = @transform_0, window_bounds = array<i64: 1, 2, 256>}, {pipeline_mode = #tpu.pipeline_mode<synchronous>, transform_indices = @transform_1, window_bounds = array<i64: 64, 32>}, {pipeline_mode = #tpu.pipeline_mode<synchronous>, transform_indices = @transform_2, window_bounds = array<i64: 64, 1>}, {transform_indices = @transform_3, window_bounds = array<i64: 1, 64, 128>}]} {
    %c128_i32 = arith.constant 128 : i32
    %0 = arith.muli %arg1, %c128_i32 : i32
    %1 = tpu.assume_multiple %0, 128 : i32
    %c0 = arith.constant 0 : index
    %c0_0 = arith.constant 0 : index
    %2 = arith.index_cast %1 : i32 to index
    %3 = vector.load %arg2[%c0, %c0_0, %2] : memref<1x2x256xf32, #tpu.memory_space<vmem>>, vector<1x2x142xf32>
    %4 = vector.shape_cast %3 : vector<1x2x142xf32> to vector<2x142xf32>
    %cst = arith.constant 0.000000e+00 : f32
    %5 = vector.broadcast %cst : f32 to vector<2x142xf32>
    %6 = arith.subf %5, %4 : vector<2x142xf32>
    %7 = math.exp %6 : vector<2x142xf32>
    %cst_1 = arith.constant 1.000000e+00 : f32
    %8 = vector.broadcast %cst_1 : f32 to vector<2x142xf32>
    %9 = arith.addf %8, %7 : vector<2x142xf32>
    %cst_2 = arith.constant 1.000000e+00 : f32
    %10 = vector.broadcast %cst_2 : f32 to vector<2x142xf32>
    %11 = arith.divf %10, %9 : vector<2x142xf32>
    %12 = vector.extract_strided_slice %11 {offsets = [0, 0], sizes = [2, 128], strides = [1, 1]} : vector<2x142xf32> to vector<2x128xf32>
    %c0_3 = arith.constant 0 : index
    %c0_4 = arith.constant 0 : index
    %13 = vector.load %arg6[%c0_3, %c0_4] : memref<32x128xf32, #tpu.memory_space<vmem>>, vector<2x128xf32>
    tpu.vector_store %arg6[%c0_3, %c0_4], %12 {strides = array<i32>} : memref<32x128xf32, #tpu.memory_space<vmem>>, vector<2x128xf32>,
    %14 = vector.extract_strided_slice %11 {offsets = [0, 1], sizes = [2, 128], strides = [1, 1]} : vector<2x142xf32> to vector<2x128xf32>
    %c2 = arith.constant 2 : index
    %c0_5 = arith.constant 0 : index
    %15 = vector.load %arg6[%c2, %c0_5] : memref<32x128xf32, #tpu.memory_space<vmem>>, vector<2x128xf32>
    tpu.vector_store %arg6[%c2, %c0_5], %14 {strides = array<i32>} : memref<32x128xf32, #tpu.memory_space<vmem>>, vector<2x128xf32>,
    %16 = vector.extract_strided_slice %11 {offsets = [0, 2], sizes = [2, 128], strides = [1, 1]} : vector<2x142xf32> to vector<2x128xf32>
    %c4 = arith.constant 4 : index
    %c0_6 = arith.constant 0 : index
    %17 = vector.load %arg6[%c4, %c0_6] : memref<32x128xf32, #tpu.memory_space<vmem>>, vector<2x128xf32>
    tpu.vector_store %arg6[%c4, %c0_6], %16 {strides = array<i32>} : memref<32x128xf32, #tpu.memory_space<vmem>>, vector<2x128xf32>,
    %18 = vector.extract_strided_slice %11 {offsets = [0, 3], sizes = [2, 128], strides = [1, 1]} : vector<2x142xf32> to vector<2x128xf32>
    %c6 = arith.constant 6 : index
    %c0_7 = arith.constant 0 : index
    %19 = vector.load %arg6[%c6, %c0_7] : memref<32x128xf32, #tpu.memory_space<vmem>>, vector<2x128xf32>
    tpu.vector_store %arg6[%c6, %c0_7], %18 {strides = array<i32>} : memref<32x128xf32, #tpu.memory_space<vmem>>, vector<2x128xf32>,
    %20 = vector.extract_strided_slice %11 {offsets = [0, 4], sizes = [2, 128], strides = [1, 1]} : vector<2x142xf32> to vector<2x128xf32>
    %c8 = arith.constant 8 : index
    %c0_8 = arith.constant 0 : index
    %21 = vector.load %arg6[%c8, %c0_8] : memref<32x128xf32, #tpu.memory_space<vmem>>, vector<2x128xf32>
    tpu.vector_store %arg6[%c8, %c0_8], %20 {strides = array<i32>} : memref<32x128xf32, #tpu.memory_space<vmem>>, vector<2x128xf32>,
    %22 = vector.extract_strided_slice %11 {offsets = [0, 5], sizes = [2, 128], strides = [1, 1]} : vector<2x142xf32> to vector<2x128xf32>
    %c10 = arith.constant 10 : index
    %c0_9 = arith.constant 0 : index
    %23 = vector.load %arg6[%c10, %c0_9] : memref<32x128xf32, #tpu.memory_space<vmem>>, vector<2x128xf32>
    tpu.vector_store %arg6[%c10, %c0_9], %22 {strides = array<i32>} : memref<32x128xf32, #tpu.memory_space<vmem>>, vector<2x128xf32>,
    %24 = vector.extract_strided_slice %11 {offsets = [0, 6], sizes = [2, 128], strides = [1, 1]} : vector<2x142xf32> to vector<2x128xf32>
    %c12 = arith.constant 12 : index
    %c0_10 = arith.constant 0 : index
    %25 = vector.load %arg6[%c12, %c0_10] : memref<32x128xf32, #tpu.memory_space<vmem>>, vector<2x128xf32>
    tpu.vector_store %arg6[%c12, %c0_10], %24 {strides = array<i32>} : memref<32x128xf32, #tpu.memory_space<vmem>>, vector<2x128xf32>,
    %26 = vector.extract_strided_slice %11 {offsets = [0, 7], sizes = [2, 128], strides = [1, 1]} : vector<2x142xf32> to vector<2x128xf32>
    %c14 = arith.constant 14 : index
    %c0_11 = arith.constant 0 : index
    %27 = vector.load %arg6[%c14, %c0_11] : memref<32x128xf32, #tpu.memory_space<vmem>>, vector<2x128xf32>
    tpu.vector_store %arg6[%c14, %c0_11], %26 {strides = array<i32>} : memref<32x128xf32, #tpu.memory_space<vmem>>, vector<2x128xf32>,
    %28 = vector.extract_strided_slice %11 {offsets = [0, 8], sizes = [2, 128], strides = [1, 1]} : vector<2x142xf32> to vector<2x128xf32>
    %c16 = arith.constant 16 : index
    %c0_12 = arith.constant 0 : index
    %29 = vector.load %arg6[%c16, %c0_12] : memref<32x128xf32, #tpu.memory_space<vmem>>, vector<2x128xf32>
    tpu.vector_store %arg6[%c16, %c0_12], %28 {strides = array<i32>} : memref<32x128xf32, #tpu.memory_space<vmem>>, vector<2x128xf32>,
    %30 = vector.extract_strided_slice %11 {offsets = [0, 9], sizes = [2, 128], strides = [1, 1]} : vector<2x142xf32> to vector<2x128xf32>
    %c18 = arith.constant 18 : index
    %c0_13 = arith.constant 0 : index
    %31 = vector.load %arg6[%c18, %c0_13] : memref<32x128xf32, #tpu.memory_space<vmem>>, vector<2x128xf32>
    tpu.vector_store %arg6[%c18, %c0_13], %30 {strides = array<i32>} : memref<32x128xf32, #tpu.memory_space<vmem>>, vector<2x128xf32>,
    %32 = vector.extract_strided_slice %11 {offsets = [0, 10], sizes = [2, 128], strides = [1, 1]} : vector<2x142xf32> to vector<2x128xf32>
    %c20 = arith.constant 20 : index
    %c0_14 = arith.constant 0 : index
    %33 = vector.load %arg6[%c20, %c0_14] : memref<32x128xf32, #tpu.memory_space<vmem>>, vector<2x128xf32>
    tpu.vector_store %arg6[%c20, %c0_14], %32 {strides = array<i32>} : memref<32x128xf32, #tpu.memory_space<vmem>>, vector<2x128xf32>,
    %34 = vector.extract_strided_slice %11 {offsets = [0, 11], sizes = [2, 128], strides = [1, 1]} : vector<2x142xf32> to vector<2x128xf32>
    %c22 = arith.constant 22 : index
    %c0_15 = arith.constant 0 : index
    %35 = vector.load %arg6[%c22, %c0_15] : memref<32x128xf32, #tpu.memory_space<vmem>>, vector<2x128xf32>
    tpu.vector_store %arg6[%c22, %c0_15], %34 {strides = array<i32>} : memref<32x128xf32, #tpu.memory_space<vmem>>, vector<2x128xf32>,
    %36 = vector.extract_strided_slice %11 {offsets = [0, 12], sizes = [2, 128], strides = [1, 1]} : vector<2x142xf32> to vector<2x128xf32>
    %c24 = arith.constant 24 : index
    %c0_16 = arith.constant 0 : index
    %37 = vector.load %arg6[%c24, %c0_16] : memref<32x128xf32, #tpu.memory_space<vmem>>, vector<2x128xf32>
    tpu.vector_store %arg6[%c24, %c0_16], %36 {strides = array<i32>} : memref<32x128xf32, #tpu.memory_space<vmem>>, vector<2x128xf32>,
    %38 = vector.extract_strided_slice %11 {offsets = [0, 13], sizes = [2, 128], strides = [1, 1]} : vector<2x142xf32> to vector<2x128xf32>
    %c26 = arith.constant 26 : index
    %c0_17 = arith.constant 0 : index
    %39 = vector.load %arg6[%c26, %c0_17] : memref<32x128xf32, #tpu.memory_space<vmem>>, vector<2x128xf32>
    tpu.vector_store %arg6[%c26, %c0_17], %38 {strides = array<i32>} : memref<32x128xf32, #tpu.memory_space<vmem>>, vector<2x128xf32>,
    %40 = vector.extract_strided_slice %11 {offsets = [0, 14], sizes = [2, 128], strides = [1, 1]} : vector<2x142xf32> to vector<2x128xf32>
    %c28 = arith.constant 28 : index
    %c0_18 = arith.constant 0 : index
    %41 = vector.load %arg6[%c28, %c0_18] : memref<32x128xf32, #tpu.memory_space<vmem>>, vector<2x128xf32>
    tpu.vector_store %arg6[%c28, %c0_18], %40 {strides = array<i32>} : memref<32x128xf32, #tpu.memory_space<vmem>>, vector<2x128xf32>,
    %cst_19 = arith.constant 0.000000e+00 : f32
    %42 = vector.broadcast %cst_19 : f32 to vector<2x128xf32>
    %c30 = arith.constant 30 : index
    %c0_20 = arith.constant 0 : index
    %43 = vector.load %arg6[%c30, %c0_20] : memref<32x128xf32, #tpu.memory_space<vmem>>, vector<2x128xf32>
    tpu.vector_store %arg6[%c30, %c0_20], %42 {strides = array<i32>} : memref<32x128xf32, #tpu.memory_space<vmem>>, vector<2x128xf32>,
    %c0_21 = arith.constant 0 : index
    %c0_22 = arith.constant 0 : index
    %44 = vector.load %arg3[%c0_21, %c0_22] : memref<64x32xf32, #tpu.memory_space<vmem>>, vector<64x32xf32>
    %c0_23 = arith.constant 0 : index
    %c0_24 = arith.constant 0 : index
    %45 = vector.load %arg6[%c0_23, %c0_24] : memref<32x128xf32, #tpu.memory_space<vmem>>, vector<32x128xf32>
    %cst_25 = arith.constant dense<0.000000e+00> : vector<64x128xf32>
    %46 = tpu.matmul %44, %45, %cst_25 {dimension_numbers = #tpu.dot_dimension_numbers<[1], [0], [0], [1], [0, 0, 1, 1], [], []>} : vector<64x32xf32>, vector<32x128xf32>, vector<64x128xf32> -> vector<64x128xf32>
    %c0_26 = arith.constant 0 : index
    %c0_27 = arith.constant 0 : index
    %47 = vector.load %arg4[%c0_26, %c0_27] : memref<64x1xf32, #tpu.memory_space<vmem>>, vector<64x1xf32>
    %48 = vector.broadcast %47 : vector<64x1xf32> to vector<64x128xf32>
    %49 = arith.addf %46, %48 : vector<64x128xf32>
    %cst_28 = arith.constant 0.000000e+00 : f32
    %50 = vector.broadcast %cst_28 : f32 to vector<64x128xf32>
    %51 = arith.maximumf %49, %50 : vector<64x128xf32>
    %c0_29 = arith.constant 0 : index
    %c0_30 = arith.constant 0 : index
    %c0_31 = arith.constant 0 : index
    %52 = vector.load %arg5[%c0_29, %c0_30, %c0_31] : memref<1x64x128xf32, #tpu.memory_space<vmem>>, vector<1x64x128xf32>
    %53 = vector.shape_cast %52 : vector<1x64x128xf32> to vector<64x128xf32>
    %54 = vector.shape_cast %51 : vector<64x128xf32> to vector<1x64x128xf32>
    tpu.vector_store %arg5[%c0_29, %c0_30, %c0_31], %54 {strides = array<i32>} : memref<1x64x128xf32, #tpu.memory_space<vmem>>, vector<1x64x128xf32>,
    return
  }
  func.func @transform_0(%arg0: i32, %arg1: i32) -> (i32, i32, i32) {
    %c0_i32 = arith.constant 0 : i32
    %c0_i32_0 = arith.constant 0 : i32
    %c0_i32_1 = arith.constant 0 : i32
    return %arg0, %c0_i32, %c0_i32_0 : i32, i32, i32
  }
  func.func @transform_1(%arg0: i32, %arg1: i32) -> (i32, i32) {
    %c0_i32 = arith.constant 0 : i32
    %c0_i32_0 = arith.constant 0 : i32
    %c0_i32_1 = arith.constant 0 : i32
    return %c0_i32, %c0_i32_0 : i32, i32
  }
  func.func @transform_2(%arg0: i32, %arg1: i32) -> (i32, i32) {
    %c0_i32 = arith.constant 0 : i32
    %c0_i32_0 = arith.constant 0 : i32
    %c0_i32_1 = arith.constant 0 : i32
    return %c0_i32, %c0_i32_0 : i32, i32
  }
  func.func @transform_3(%arg0: i32, %arg1: i32) -> (i32, i32, i32) {
    %c0_i32 = arith.constant 0 : i32
    %c0_i32_0 = arith.constant 0 : i32
    return %arg0, %c0_i32, %arg1 : i32, i32, i32
  }
}

</mosaic_0001>

<bundles_post_ra>
// kernel: in_conv1d.1
= control target key start
LH: loop header
LB: loop body
LE: loop exit
PB: predicated region body
PF: predicated region fallthrough
CT: control target
= control target key end

     0   :  { %8 = vsyncpa [#allocation4], 0  ;;  %s1030_s0 = inlined_call_operand.vmem [shape: f32[2,2,256], index: 0, kind: input, shape index: {}]   ;;  %s1031_s1 = inlined_call_operand.vmem [shape: f32[64,32], index: 1, kind: input, shape index: {}]   ;;  %s1032_s2 = inlined_call_operand.vmem [shape: f32[64,1], index: 2, kind: input, shape index: {}]   ;;  %s1033_s3 = inlined_call_operand.hbm [shape: f32[2,64,100], index: 3, kind: output, shape index: {}]  }
   0x1   :  { %10 = vsyncpa [#allocation4 + $0x1], 0  ;;  %s831_s12 = smov 0   ;;  %s833_s13 = smov 0  }
   0x2   :  { %s835_s14 = smov 0   ;;  %s837_s15 = smov 0  }
   0x3   :  { %s839_s16 = smov 0   ;;  %s841_s17 = smov 0  }
   0x4 LB: > { %s598_s18 = sadd.s32 4294967295, %s791_s17   ;;  %s599_s19 = sadd.s32 4294967294, %s791_s17   ;;  %s791_s17 = sphi %s841_s17, %s16_s17   ;;  %s787_s16 = sphi %s839_s16, %s1040_s16   ;;  %s783_s15 = sphi %s837_s15, %s1039_s15   ;;  %s779_s14 = sphi %s835_s14, %s1038_s14   ;;  %s775_s13 = sphi %s833_s13, %s1037_s13   ;;  %s771_s12 = sphi %s831_s12, %s1036_s12  }
   0x5   : > { %s28_s20 = sadd.s32 1, %s787_s16  ;;  %s105_s21 = sadd.s32 1, %s779_s14 }
   0x6   : > { %p30_p0 = scmp.ge.s32.totalorder %s28_s20, 2  ;;  %p115_p1 = scmp.ne.s32.totalorder %s779_s14, %s775_s13 }
   0x7   : > { %p116_p2 = scmp.eq.s32.totalorder %s598_s18, 1  ;;  %p121_p3 = scmp.ne.s32.totalorder %s775_s13, %s771_s12 }
   0x8   : > { %s1042_s20 = smov (%p30_p0, %s28_s20), 0  ;;  %p122_p5 = scmp.eq.s32.totalorder %s599_s19, 1 }
   0x9   : > { %p871_p4 = por %p116_p2, %p115_p1  ;;  %s100_s23 = ssub.s32 %s787_s16, %s1042_s20 }
   0xa   : > { %p602_p6 = scmp.ge.s32.totalorder %s791_s17, 1  ;;  %p103_p7 = scmp.eq.s32.totalorder %s100_s23, 0 }
   0xb   : > { %p878_p8 = por %p122_p5, %p121_p3  ;;  %p154_p9 = scmp.lt.s32.totalorder %s791_s17, 3 }
   0xc   : > { %s884_s25 = scalar_select %p103_p7, %s779_s14, %s105_s21  }
   0xd   : > { %p155_p10 = pnand %p602_p6, %p154_p9 }
   0xe   : > { %p178_p11 = scmp.lt.s32.totalorder (!%p155_p10), %s783_s15, 1  ;;  %s793_s4 = smov (!%p155_p10), 127  }
   0xf   : > { %158 = sbr.rel (%p155_p10) target bundleno = 451 (0x1c3), region = 32  ;;  %s794_s5 = smov (!%p155_p10), 126  }
  0x10   : > { %s795_s6 = smov (!%p155_p10), 124   ;;  %s796_s7 = smov (!%p155_p10), 123  }
  0x11   : > { %s797_s8 = smov (!%p155_p10), 122   ;;  %s798_s9 = smov (!%p155_p10), 121  }
  0x12   : > { %s799_s10 = smov (!%p155_p10), 120   ;;  %s800_s11 = smov (!%p155_p10), 119  }
  0x13   : > { %s801_s18 = smov (!%p155_p10), 118   ;;  %s802_s19 = smov (!%p155_p10), 117  }
  0x14   : > { %s179_s26 = scalar_select %p178_p11, %s783_s15, 1  ;;  %vm217_vm4 = vcmask 1039360   ;;  %vm250_vm5 = vcmask 1014784   ;;  %vm261_vm6 = vcmask 1006592   ;;  %vm272_vm7 = vcmask 998400  }
  0x15   : > { %s803_s21 = smov 116   ;;  %s804_s23 = smov 115   ;;  %vm283_vm8 = vcmask 990208   ;;  %vm294_vm9 = vcmask 982016   ;;  %vm305_vm10 = vcmask 973824   ;;  %vm316_vm11 = vcmask 965632  }
  0x16   : > { %s619_s27 = sshll.u32 %s179_s26, 2  ;;  %s805_s26 = smov 125   ;;  %vm327_vm12 = vcmask 957440   ;;  %vm360_vm13 = vcmask 932864   ;;  %vm338_vm14 = vcmask 949248   ;;  %vm349_vm15 = vcmask 941056  }
  0x17   : > { %s182_s30 = scalar_lea.vmem %s1030_s0, %s619_s27  ;;  %s806_s27 = smov 114  }
  0x18   : > { %v188_v0 = vld [vmem:[%s182_s30] sm:$0xf]  ;;  %s620_s29 = sshll.u32 %s783_s15, 6 }
  0x19   : > { %v189_v1 = vsub.f32 0.0, %v188_v0 }
  0x1b   : > { %v190_v2 = vmul.f32 1.442695, %v189_v1 }
  0x1d   : > { %709 = vpow2.f32 %v190_v2 }
  0x23   : > { %v710_v3 = vpop.eup %709 }
  0x24   : > { %v192_v4 = vadd.f32 1.0, %v710_v3 }
  0x26   : > { %711 = vrcp.f32 %v192_v4  ;;  %v204_v7 = vand.u32 2147483648, %v192_v4  ;;  %vm198_vm0 = vweird.f32 %v192_v4  ;;  %v202_v9 = vand.u32 2147483647, %v192_v4 }
  0x28   : > { %v205_v11 = vor.u32 1.1754944e-38, %v204_v7  ;;  %vm203_vm3 = vcmp.eq.f32.partialorder %v202_v9, 8.507059e+37  ;;  %v377_v9 = vld [vmem:[%s1032_s2] sm:$0xff] }
  0x2c   : > { %v712_v5 = vpop.eup %711 }
  0x2d   : > { %v194_v6 = vmul.f32 %v712_v5, %v192_v4  ;;  %vm199_vm1 = vweird.f32 %v712_v5  ;;  %v807_v4 = vmov 0.0  }
  0x2e   : > { %vm200_vm2 = vmor %vm198_vm0, %vm199_vm1  ;;  %364 = vst [vmem:[#allocation2 + $0x1e] sm:$0x3] %v807_v4  ;;  %vm239_vm0 = vcmask 1022976   ;;  %vm228_vm1 = vcmask 1031168  }
  0x2f   : > { %v195_v8 = vsub.f32 1.0, %v194_v6 }
  0x31   : > { %v196_v10 = vmul.f32 %v712_v5, %v195_v8 }
  0x33   : > { %v197_v12 = vadd.f32 %v712_v5, %v196_v10  ;;  %v808_v10 = vmov 0  }
  0x34   : > { %706 = vset.pattern.permute.xlu1 %v808_v10  ;;  %708 = vset.pattern.permute.xlu0 %v808_v10 }
  0x35   : > { %v201_v13 = vsel %vm200_vm2, %v712_v5, %v197_v12  ;;  %707 = vset.pattern.permute.xlu2 %v808_v10  ;;  %vm425_vm2 = vcmask 261120  }
  0x36   : > { %v891_v14 = vsel %vm203_vm3, %v205_v11, %v201_v13 }
  0x37   : > { %210 = vst [vmem:[#allocation1] ss:$4 sm:$0xff] %v891_v14 }
  0x38   : > { %208 = vst [vmem:[#allocation2] sm:$0x3] %v891_v14 }
  0x3e   : > { %v211_v15 = vld.sshfl [vmem:[#allocation1] sm:$0xff pattern:$0x73625140]  ;;  %v212_v16 = vld.sshfl [vmem:[#allocation1 + $0x8] sm:$0xff pattern:$0x73625140] }
  0x3f   : > { %221 = vst [vmem:[#allocation1] ss:$4 sm:$0xff] %v891_v14  ;;  %213 = vrot.lane.b32.xlu1 %v211_v15, %s793_s4  ;;  %215 = vrot.lane.b32.xlu2 %v212_v16, %s793_s4 }
  0x46   : > { %v222_v17 = vld.sshfl [vmem:[#allocation1] sm:$0xff pattern:$0x73625140]  ;;  %v896_v18 = vld.sshfl [vmem:[#allocation1 + $0x8] sm:$0xff pattern:$0x73625140] }
  0x47   : > { %224 = vrot.lane.b32.xlu0 %v222_v17, %s794_s5  ;;  %232 = vst [vmem:[#allocation1] ss:$4 sm:$0xff] %v891_v14 }
  0x4e   : > { %v900_v19 = vld.sshfl [vmem:[#allocation1] sm:$0xff pattern:$0x73625140]  ;;  %v902_v20 = vld.sshfl [vmem:[#allocation1 + $0x8] sm:$0xff pattern:$0x73625140] }
  0x4f   : > { %243 = vst [vmem:[#allocation1] ss:$4 sm:$0xff] %v891_v14 }
  0x56   : > { %v245_v21 = vld.sshfl [vmem:[#allocation1 + $0x8] sm:$0xff pattern:$0x73625140]  ;;  %v244_v22 = vld.sshfl [vmem:[#allocation1] sm:$0xff pattern:$0x73625140] }
  0x57   : > { %248 = vrot.lane.b32.xlu0 %v245_v21, %s795_s6  ;;  %254 = vst [vmem:[#allocation1] ss:$4 sm:$0xff] %v891_v14  ;;  %246 = vrot.lane.b32.xlu2 %v244_v22, %s795_s6  ;;  %v378_v21 = vld [vmem:[%s1032_s2 + $0x8] sm:$0xff] }
  0x5e   : > { %v255_v23 = vld.sshfl [vmem:[#allocation1] sm:$0xff pattern:$0x73625140]  ;;  %v256_v24 = vld.sshfl [vmem:[#allocation1 + $0x8] sm:$0xff pattern:$0x73625140] }
  0x5f   : > { %257 = vrot.lane.b32.xlu1 %v255_v23, %s796_s7  ;;  %265 = vst [vmem:[#allocation1] ss:$4 sm:$0xff] %v891_v14  ;;  %259 = vrot.lane.b32.xlu2 %v256_v24, %s796_s7 }
  0x66   : > { %v266_v25 = vld.sshfl [vmem:[#allocation1] sm:$0xff pattern:$0x73625140]  ;;  %v267_v26 = vld.sshfl [vmem:[#allocation1 + $0x8] sm:$0xff pattern:$0x73625140] }
  0x67   : > { %268 = vrot.lane.b32.xlu0 %v266_v25, %s797_s8  ;;  %270 = vrot.lane.b32.xlu1 %v267_v26, %s797_s8  ;;  %276 = vst [vmem:[#allocation1] ss:$4 sm:$0xff] %v891_v14  ;;  %v384_v26 = vld [vmem:[%s1032_s2 + $0x38] sm:$0xff] }
  0x6e   : > { %v278_v27 = vld.sshfl [vmem:[#allocation1 + $0x8] sm:$0xff pattern:$0x73625140]  ;;  %v277_v28 = vld.sshfl [vmem:[#allocation1] sm:$0xff pattern:$0x73625140] }
  0x6f   : > { %281 = vrot.lane.b32.xlu0 %v278_v27, %s798_s9  ;;  %287 = vst [vmem:[#allocation1] ss:$4 sm:$0xff] %v891_v14  ;;  %279 = vrot.lane.b32.xlu2 %v277_v28, %s798_s9  ;;  %v381_v27 = vld [vmem:[%s1032_s2 + $0x20] sm:$0xff] }
  0x76   : > { %v289_v29 = vld.sshfl [vmem:[#allocation1 + $0x8] sm:$0xff pattern:$0x73625140]  ;;  %v288_v30 = vld.sshfl [vmem:[#allocation1] sm:$0xff pattern:$0x73625140] }
  0x77   : > { %292 = vrot.lane.b32.xlu1 %v289_v29, %s799_s10  ;;  %290 = vrot.lane.b32.xlu0 %v288_v30, %s799_s10  ;;  %298 = vst [vmem:[#allocation1] ss:$4 sm:$0xff] %v891_v14 }
  0x7e   : > { %v300_v31 = vld.sshfl [vmem:[#allocation1 + $0x8] sm:$0xff pattern:$0x73625140]  ;;  %v299_v32 = vld.sshfl [vmem:[#allocation1] sm:$0xff pattern:$0x73625140] }
  0x7f   : > { %303 = vrot.lane.b32.xlu0 %v300_v31, %s800_s11  ;;  %309 = vst [vmem:[#allocation1] ss:$4 sm:$0xff] %v891_v14  ;;  %301 = vrot.lane.b32.xlu2 %v299_v32, %s800_s11 }
  0x86   : > { %v310_v33 = vld.sshfl [vmem:[#allocation1] sm:$0xff pattern:$0x73625140]  ;;  %v311_v34 = vld.sshfl [vmem:[#allocation1 + $0x8] sm:$0xff pattern:$0x73625140] }
  0x87   : > { %312 = vrot.lane.b32.xlu1 %v310_v33, %s801_s18  ;;  %320 = vst [vmem:[#allocation1] ss:$4 sm:$0xff] %v891_v14  ;;  %314 = vrot.lane.b32.xlu2 %v311_v34, %s801_s18  ;;  %v383_v33 = vld [vmem:[%s1032_s2 + $0x30] sm:$0xff]  ;;  %s733_s18 = scalar_lea.hbm %s1033_s3, 128 }
  0x8e   : > { %v322_v35 = vld.sshfl [vmem:[#allocation1 + $0x8] sm:$0xff pattern:$0x73625140]  ;;  %v321_v36 = vld.sshfl [vmem:[#allocation1] sm:$0xff pattern:$0x73625140] }
  0x8f   : > { %325 = vrot.lane.b32.xlu1 %v322_v35, %s802_s19  ;;  %323 = vrot.lane.b32.xlu0 %v321_v36, %s802_s19  ;;  %331 = vst [vmem:[#allocation1] ss:$4 sm:$0xff] %v891_v14  ;;  %v365_v35 = vld [vmem:[%s1031_s1] sm:$0xff]  ;;  %v367_v36 = vld [vmem:[%s1031_s1 + $0x10] sm:$0xff] }
  0x96   : > { %v332_v37 = vld.sshfl [vmem:[#allocation1] sm:$0xff pattern:$0x73625140]  ;;  %v333_v38 = vld.sshfl [vmem:[#allocation1 + $0x8] sm:$0xff pattern:$0x73625140] }
  0x97   : > { %334 = vrot.lane.b32.xlu0 %v332_v37, %s803_s21  ;;  %342 = vst [vmem:[#allocation1] ss:$4 sm:$0xff] %v891_v14  ;;  %v369_v37 = vld [vmem:[%s1031_s1 + $0x20] sm:$0xff] }
  0x99   : > { %v216_v43 = vpop.permute.xlu2 %215 }
  0x9e   : > { %v343_v39 = vld.sshfl [vmem:[#allocation1] sm:$0xff pattern:$0x73625140]  ;;  %v344_v40 = vld.sshfl [vmem:[#allocation1 + $0x8] sm:$0xff pattern:$0x73625140] }
  0x9f   : > { %336 = vrot.lane.b32.xlu0 %v333_v38, %s803_s21  ;;  %345 = vrot.lane.b32.xlu1 %v343_v39, %s804_s23  ;;  %353 = vst [vmem:[#allocation1] ss:$4 sm:$0xff] %v891_v14  ;;  %v380_v14 = vld [vmem:[%s1032_s2 + $0x18] sm:$0xff]  ;;  %v371_v38 = vld [vmem:[%s1031_s1 + $0x30] sm:$0xff] }
  0xa0   : > { %v366_v39 = vld [vmem:[%s1031_s1 + $0x8] sm:$0xff] }
  0xa6   : > { %v354_v41 = vld.sshfl [vmem:[#allocation1] sm:$0xff pattern:$0x73625140]  ;;  %v355_v42 = vld.sshfl [vmem:[#allocation1 + $0x8] sm:$0xff pattern:$0x73625140] }
  0xa7   : > { %347 = vrot.lane.b32.xlu1 %v344_v40, %s804_s23  ;;  %237 = vrot.lane.b32.xlu0 %v902_v20, %s805_s26  ;;  %v368_v40 = vld [vmem:[%s1031_s1 + $0x18] sm:$0xff] }
  0xa8   : > { %356 = vrot.lane.b32.xlu2 %v354_v41, %s806_s27  ;;  %v370_v41 = vld [vmem:[%s1031_s1 + $0x28] sm:$0xff] }
  0xaf   : > { %226 = vrot.lane.b32.xlu1 %v896_v18, %s794_s5  ;;  %v379_v18 = vld [vmem:[%s1032_s2 + $0x10] sm:$0xff]  ;;  %s520_s5 = scalar_lea.hbm %s1033_s3, %s620_s29 }
  0xb0   : > { %358 = vrot.lane.b32.xlu2 %v355_v42, %s806_s27  ;;  %397 = vperm.xlu0 %708, %v379_v18   ;;  %v372_v42 = vld [vmem:[%s1031_s1 + $0x38] sm:$0xff]  ;;  %s523_s6 = sshll.u32 %s520_s5, 4  ;;  %s524_s6 = int_to_ptr.hbm [resolvable:$true] %s523_s6 }
  0xb1   : > { %v214_v44 = vpop.permute.xlu1 %213  ;;  %v247_v47 = vpop.permute.xlu2 %246  ;;  %s727_s8 = sshra.s32 %s524_s6, 4  ;;  %s728_s8 = int_to_ptr.hbm [resolvable:$true] %s727_s8 }
  0xb2   : > { %v218_v45 = vsel %vm217_vm4, %v214_v44, %v216_v43  ;;  %s729_s9 = scalar_lea.hbm %s728_s8, 64  ;;  %p734_p1 = scmp.lt.s32.totalorder %s728_s8, %s1033_s3 }
  0xb3   : > { %220 = vst [vmem:[#allocation2 + $0x2] sm:$0x3] %v218_v45  ;;  %p730_p12 = scmp.ne.s32.totalorder %s728_s8, %s729_s9  ;;  %p735_p2 = scmp.lt.s32.totalorder %s733_s18, %s729_s9 }
  0xb5   : > { %p731_p13 = pnand %p730_p12, %p871_p4  ;;  %p736_p3 = por %p735_p2, %p734_p1 }
  0xb7   : > { %387 = vperm.xlu1 %706, %v377_v9   ;;  %p732_p0 = pneg %p731_p13 }
  0xb8   : > { %235 = vrot.lane.b32.xlu2 %v900_v19, %s805_s26  ;;  %v382_v19 = vld [vmem:[%s1032_s2 + $0x28] sm:$0xff]  ;;  %422 = vperm.xlu0 %708, %v384_v26   ;;  %s175_s26 = sand.u32 1, %s775_s13  }
  0xb9   : > { %v919_v46 = vpop.permute.xlu0 %224  ;;  %v260_v50 = vpop.permute.xlu2 %259  ;;  %s603_s27 = sshll.u32 %s175_s26, 6  ;;  %s508_s7 = scalar_lea.sflag [#allocation4], %s175_s26 }
  0xba   : > { %s981_s28 = scalar_lea.vmem [#allocation3], %s603_s27  ;;  %p737_p5 = pnand %p736_p3, %p732_p0 }
  0xbb   : > { %s521_s15 = sshll.u32 %s981_s28, 4  ;;  %s522_s15 = int_to_ptr.vmem [resolvable:$true] %s521_s15 }
  0xbf   : > { %402 = vperm.xlu1 %706, %v380_v14  }
  0xc0   : > { %392 = vperm.xlu2 %707, %v378_v21  }
  0xc7   : > { %412 = vperm.xlu1 %706, %v382_v19  }
  0xc8   : > { %407 = vperm.xlu2 %707, %v381_v27  }
  0xc9   : > { %v249_v48 = vpop.permute.xlu0 %248  ;;  %v280_v56 = vpop.permute.xlu2 %279 }
  0xca   : > { %v251_v49 = vsel %vm250_vm5, %v247_v47, %v249_v48 }
  0xcb   : > { %253 = vst [vmem:[#allocation2 + $0x8] sm:$0x3] %v251_v49 }
  0xd0   : > { %417 = vperm.xlu2 %707, %v383_v33  }
  0xd1   : > { %v258_v51 = vpop.permute.xlu1 %257 }
  0xd2   : > { %v262_v52 = vsel %vm261_vm6, %v258_v51, %v260_v50 }
  0xd3   : > { %264 = vst [vmem:[#allocation2 + $0xa] sm:$0x3] %v262_v52 }
  0xd9   : > { %v269_v53 = vpop.permute.xlu0 %268  ;;  %v271_v54 = vpop.permute.xlu1 %270 }
  0xda   : > { %v273_v55 = vsel %vm272_vm7, %v269_v53, %v271_v54  ;;  %v302_v62 = vpop.permute.xlu2 %301 }
  0xdb   : > { %275 = vst [vmem:[#allocation2 + $0xc] sm:$0x3] %v273_v55 }
  0xe1   : > { %v282_v57 = vpop.permute.xlu0 %281 }
  0xe2   : > { %v284_v58 = vsel %vm283_vm8, %v280_v56, %v282_v57  ;;  %v315_v1 = vpop.permute.xlu2 %314 }
  0xe3   : > { %286 = vst [vmem:[#allocation2 + $0xe] sm:$0x3] %v284_v58 }
  0xe9   : > { %v293_v59 = vpop.permute.xlu1 %292  ;;  %v291_v60 = vpop.permute.xlu0 %290 }
  0xea   : > { %v295_v61 = vsel %vm294_vm9, %v291_v60, %v293_v59  ;;  %v374_v32 = vld [vmem:[#allocation2 + $0x8] sm:$0xff] }
  0xeb   : > { %297 = vst [vmem:[#allocation2 + $0x10] sm:$0x3] %v295_v61 }
  0xf1   : > { %v304_v63 = vpop.permute.xlu0 %303 }
  0xf2   : > { %v306_v0 = vsel %vm305_vm10, %v302_v62, %v304_v63 }
  0xf3   : > { %308 = vst [vmem:[#allocation2 + $0x12] sm:$0x3] %v306_v0 }
  0xf9   : > { %v313_v2 = vpop.permute.xlu1 %312 }
  0xfa   : > { %v317_v3 = vsel %vm316_vm11, %v313_v2, %v315_v1 }
  0xfb   : > { %319 = vst [vmem:[#allocation2 + $0x14] sm:$0x3] %v317_v3 }
 0x101   : > { %v326_v5 = vpop.permute.xlu1 %325  ;;  %v324_v6 = vpop.permute.xlu0 %323 }
 0x102   : > { %v328_v7 = vsel %vm327_vm12, %v324_v6, %v326_v5  ;;  %v357_v8 = vpop.permute.xlu2 %356 }
 0x103   : > { %330 = vst [vmem:[#allocation2 + $0x16] sm:$0x3] %v328_v7 }
 0x109   : > { %v335_v11 = vpop.permute.xlu0 %334 }
 0x10a   : > { %v359_v12 = vpop.permute.xlu2 %358  ;;  %v375_v31 = vld [vmem:[#allocation2 + $0x10] sm:$0xff] }
 0x10b   : > { %v361_v13 = vsel %vm360_vm13, %v357_v8, %v359_v12 }
 0x10c   : > { %363 = vst [vmem:[#allocation2 + $0x1c] sm:$0x3] %v361_v13 }
 0x111   : > { %v337_v15 = vpop.permute.xlu0 %336  ;;  %v346_v16 = vpop.permute.xlu1 %345 }
 0x112   : > { %v339_v17 = vsel %vm338_vm14, %v335_v11, %v337_v15  ;;  %v236_v20 = vpop.permute.xlu2 %235 }
 0x113   : > { %341 = vst [vmem:[#allocation2 + $0x18] sm:$0x3] %v339_v17 }
 0x119   : > { %v348_v22 = vpop.permute.xlu1 %347  ;;  %v238_v23 = vpop.permute.xlu0 %237 }
 0x11a   : > { %v350_v24 = vsel %vm349_vm15, %v346_v16, %v348_v22  ;;  %v240_v25 = vsel %vm239_vm0, %v236_v20, %v238_v23  ;;  %v393_v43 = vpop.permute.xlu2 %392 }
 0x11b   : > { %352 = vst [vmem:[#allocation2 + $0x1a] sm:$0x3] %v350_v24 }
 0x11c   : > { %242 = vst [vmem:[#allocation2 + $0x6] sm:$0x3] %v240_v25 }
 0x121   : > { %v227_v28 = vpop.permute.xlu1 %226 }
 0x122   : > { %v229_v29 = vsel %vm228_vm1, %v919_v46, %v227_v28  ;;  %v376_v30 = vld [vmem:[#allocation2 + $0x18] sm:$0xff]  ;;  %v408_v45 = vpop.permute.xlu2 %407  ;;  %v398_v46 = vpop.permute.xlu0 %397 }
 0x123   : > { %231 = vst [vmem:[#allocation2 + $0x4] sm:$0x3] %v229_v29  ;;  %462 = vmatpush.msra.mxu0 %v376_v30  ;;  %621 = vmatpush.msra.mxu1 %v376_v30 }
 0x124   : > { %622 = vmatpush.msra.mxu2 %v376_v30  ;;  %623 = vmatpush.msra.mxu3 %v376_v30 }
 0x125   : > { %463 = vmatpush.msra.mxu0 %v375_v31  ;;  %624 = vmatpush.msra.mxu1 %v375_v31 }
 0x126   : > { %625 = vmatpush.msra.mxu2 %v375_v31  ;;  %626 = vmatpush.msra.mxu3 %v375_v31 }
 0x127   : > { %464 = vmatpush.msra.mxu0 %v374_v32  ;;  %627 = vmatpush.msra.mxu1 %v374_v32 }
 0x128   : > { %628 = vmatpush.msra.mxu2 %v374_v32  ;;  %629 = vmatpush.msra.mxu3 %v374_v32 }
 0x129   : > { %v388_v44 = vpop.permute.xlu1 %387 }
 0x12a   : > { %v373_v34 = vld [vmem:[#allocation2] sm:$0xff]  ;;  %v418_v54 = vpop.permute.xlu2 %417  ;;  %v423_v4 = vpop.permute.xlu0 %422 }
 0x12b   : > { %465 = vmatpush.msra.mxu0 %v373_v34  ;;  %630 = vmatpush.msra.mxu1 %v373_v34 }
 0x12c   : > { %631 = vmatpush.msra.mxu2 %v373_v34  ;;  %632 = vmatpush.msra.mxu3 %v373_v34 }
 0x12d   : > { %606 = vmatmul.msk.f32.vlgmr.msra.gmra.mxu0 %vm425_vm2, %v365_v35  ;;  %608 = vmatmul.msk.f32.vlgmr.msra.gmra.mxu1 %vm425_vm2, %v367_v36 }
 0x12e   : > { %610 = vmatmul.msk.f32.vlgmr.msra.gmra.mxu2 %vm425_vm2, %v369_v37  ;;  %612 = vmatmul.msk.f32.vlgmr.msra.gmra.mxu3 %vm425_vm2, %v371_v38 }
 0x131   : > { %v403_v53 = vpop.permute.xlu1 %402 }
 0x135   : > { %607 = vmatmul.msk.f32.gmra.mxu0 %vm425_vm2, %v366_v39  ;;  %609 = vmatmul.msk.f32.gmra.mxu1 %vm425_vm2, %v368_v40 }
 0x136   : > { %611 = vmatmul.msk.f32.gmra.mxu2 %vm425_vm2, %v370_v41  ;;  %613 = vmatmul.msk.f32.gmra.mxu3 %vm425_vm2, %v372_v42 }
 0x139   : > { %v413_v3 = vpop.permute.xlu1 %412 }
 0x1aa   : > { %v467_v47 = vpop.f32.mrf.mxu0  ;;  %v473_v48 = vpop.f32.mrf.mxu1 }
 0x1ab   : > { %v468_v49 = vadd.f32 %v467_v47, %v388_v44  ;;  %v474_v50 = vadd.f32 %v473_v48, %v398_v46 }
 0x1ad   : > { %v491_v51 = vmax.f32 %v468_v49, 0.0  ;;  %v493_v52 = vmax.f32 %v474_v50, 0.0 }
 0x1af   : > { %499 = vst [vmem:[%s981_s28] sm:$0xff] %v491_v51 }
 0x1b0   : > { %501 = vst [vmem:[%s981_s28 + $0x10] sm:$0xff] %v493_v52 }
 0x1b1   : > { %v479_v55 = vpop.f32.mrf.mxu2  ;;  %v485_v56 = vpop.f32.mrf.mxu3 }
 0x1b2   : > { %v480_v57 = vadd.f32 %v479_v55, %v408_v45  ;;  %v486_v58 = vadd.f32 %v485_v56, %v418_v54  ;;  %v470_v59 = vpop.f32.mrf.mxu0  ;;  %v476_v60 = vpop.f32.mrf.mxu1 }
 0x1b3   : > { %v471_v61 = vadd.f32 %v470_v59, %v393_v43  ;;  %v477_v62 = vadd.f32 %v476_v60, %v403_v53 }
 0x1b4   : > { %v495_v63 = vmax.f32 %v480_v57, 0.0  ;;  %v497_v0 = vmax.f32 %v486_v58, 0.0 }
 0x1b5   : > { %v492_v1 = vmax.f32 %v471_v61, 0.0  ;;  %v494_v2 = vmax.f32 %v477_v62, 0.0 }
 0x1b6   : > { %503 = vst [vmem:[%s981_s28 + $0x20] sm:$0xff] %v495_v63 }
 0x1b7   : > { %505 = vst [vmem:[%s981_s28 + $0x30] sm:$0xff] %v497_v0 }
 0x1b8   : > { %500 = vst [vmem:[%s981_s28 + $0x8] sm:$0xff] %v492_v1 }
 0x1b9   : > { %502 = vst [vmem:[%s981_s28 + $0x18] sm:$0xff] %v494_v2  ;;  %v482_v5 = vpop.f32.mrf.mxu2  ;;  %v488_v6 = vpop.f32.mrf.mxu3 }
 0x1ba   : > { %v483_v7 = vadd.f32 %v482_v5, %v413_v3  ;;  %v489_v8 = vadd.f32 %v488_v6, %v423_v4 }
 0x1bc   : > { %v496_v9 = vmax.f32 %v483_v7, 0.0  ;;  %v498_v10 = vmax.f32 %v489_v8, 0.0 }
 0x1be   : > { %504 = vst [vmem:[%s981_s28 + $0x28] sm:$0xff] %v496_v9 }
 0x1bf   : > { %506 = vst [vmem:[%s981_s28 + $0x38] sm:$0xff] %v498_v10 }
 0x1c0   : > { %740 = shalt.err (!%p737_p5)
}
 0x1c1   : > { %s809_s23 = smov 128   ;;  %s810_s26 = smov 8  }
 0x1c2   : > { %633 = dma.vmem_to_hbm [thread:$0]  (%p871_p4), %s522_s15, 1024, %s524_s6, %s508_s7, %s809_s23, %s809_s23, %s810_s26  }
 0x1c3 PF: > { %p639_p6 = scmp.ge.s32.totalorder %s791_s17, 2  ;;  %s538_s27 = sand.u32 1, %s771_s12  }
 0x1c4   : > { %s539_s28 = scalar_lea.sflag [#allocation4], %s538_s27 }
 0x1c5   : > { %p636_p7 = pnand %p639_p6, %p878_p8 }
 0x1c7   : > { %p637_p9 = pneg %p636_p7 }
 0x1c9   : > { %766 = dma.done.wait (%p637_p9), %s539_s28, 1024  }
 0x1ca   : > { %768 = vsyncadd (%p637_p9), %s539_s28, 4294966272  ;;  %s16_s17 = sadd.s32 1, %s791_s17   ;;  %s1036_s12 = smov %s775_s13 }
 0x1cb   : > { %p13_p10 = scmp.ge.s32.totalorder %s16_s17, 4   ;;  %s1037_s13 = smov %s779_s14 }
 0x1cc   : > { %s1038_s14 = smov %s884_s25  ;;  %s1039_s15 = smov %s787_s16 }
 0x1cd   : > { %s1040_s16 = smov %s1042_s20  ;;  %15 = sbr.rel (!%p13_p10) target bundleno = 4 (0x4), region = 68 }
 0x1d2   :  { %545 = vsyncpa [#allocation4], 1 }
 0x1d3   :  { %547 = vsyncpa [#allocation4 + $0x1], 1 }

</bundles_post_ra>
